<compile_context>
chip_gen: v5e
topology: v5e:2x2
jax: 0.10.0
libtpu: 0.0.40
codegen_flags: <defaults>
</compile_context>

<pallas_src>
import jax
import jax.numpy as jnp
from jax.experimental import pallas as pl
from jax.experimental.pallas import tpu as pltpu


def dqn_kernel(xt_ref, w1_ref, b1_ref, w2_ref, b2_ref, o_ref):
    # fc1: [H, S] @ [S, TB] -> [H, TB], f32 accumulation on the MXU.
    h = jnp.dot(w1_ref[...], xt_ref[...], preferred_element_type=jnp.float32)
    h = h + b1_ref[...]                      # [H, 1] broadcast over lanes (batch)
    h = jnp.maximum(h, 0.0)                  # ReLU on VPU
    # fc2: [A, H] @ [H, TB] -> [A, TB]
    out = jnp.dot(w2_ref[...], h.astype(w2_ref.dtype),
                  preferred_element_type=jnp.float32)
    out = out + b2_ref[...]                  # [A, 1] broadcast over lanes
    o_ref[...] = out.astype(o_ref.dtype)


def dqn_forward(x, w1, b1, w2, b2, *, block_b=512, compute_dtype=None):
    """DQN forward: relu(x @ w1.T + b1) @ w2.T + b2.

    x : [B, state_dim]                (any float dtype)
    w1: [hidden, state_dim], b1: [hidden]        (PyTorch nn.Linear layout)
    w2: [action_dim, hidden], b2: [action_dim]

    compute_dtype: optional matmul-input dtype (e.g. jnp.bfloat16 on v6e/v7x);
    accumulation is always f32, output dtype matches x.
    """
    B, S = x.shape
    H, S2 = w1.shape
    A, H2 = w2.shape
    assert S2 == S and H2 == H

    out_dtype = x.dtype
    cdt = compute_dtype if compute_dtype is not None else x.dtype

    # Glue (outside the kernel): flip batch onto lanes; keep PyTorch weight layout.
    xt = x.T.astype(cdt)                       # [S, B]   batch on lanes
    w1c = w1.astype(cdt)                       # [H, S]   matmul LHS, resident
    w2c = w2.astype(cdt)                       # [A, H]   matmul LHS, resident
    b1c = b1.reshape(H, 1).astype(jnp.float32)  # [H, 1]  column bias (f32)
    b2c = b2.reshape(A, 1).astype(jnp.float32)  # [A, 1]

    # Batch tile: as large as requested, lane-aligned (multiple of 128) unless
    # it covers the whole batch (full-extent blocks are always legal).
    tb = min(block_b, B)
    if tb != B:
        tb = max(128, (tb // 128) * 128)
    grid = (pl.cdiv(B, tb),)
    # NOTE: for very large tb (>~2048) on v7x (64 MiB VMEM), raise
    # vmem_limit_bytes in CompilerParams; unnecessary at these sizes.

    out_t = pl.pallas_call(
        dqn_kernel,
        out_shape=jax.ShapeDtypeStruct((A, B), out_dtype),
        grid_spec=pltpu.PrefetchScalarGridSpec(
            num_scalar_prefetch=0,
            grid=grid,
            in_specs=[
                pl.BlockSpec((S, tb), lambda i: (0, i)),   # x^T tile (lane-dense)
                pl.BlockSpec((H, S), lambda i: (0, 0)),    # W1 (resident)
                pl.BlockSpec((H, 1), lambda i: (0, 0)),    # b1
                pl.BlockSpec((A, H), lambda i: (0, 0)),    # W2 (resident)
                pl.BlockSpec((A, 1), lambda i: (0, 0)),    # b2
            ],
            out_specs=pl.BlockSpec((A, tb), lambda i: (0, i)),  # lane-dense store
        ),
        compiler_params=pltpu.CompilerParams(
            dimension_semantics=("parallel",),   # megacore sharding on v7x
        ),
    )(xt, w1c, b1c, w2c, b2c)

    # Glue: back to PyTorch output layout [B, action_dim].
    return out_t.T


if __name__ == "__main__":
    # Small, deterministic shapes consistent with DQN(state_dim, action_dim, hidden_dim).
    B, STATE_DIM, ACTION_DIM, HIDDEN_DIM = 256, 16, 8, 256

    key = jax.random.PRNGKey(0)
    kx, kw1, kb1, kw2, kb2 = jax.random.split(key, 5)

    x = jax.random.normal(kx, (B, STATE_DIM), dtype=jnp.float32)
    # PyTorch nn.Linear parameter shapes: weight [out, in], bias [out].
    w1 = jax.random.normal(kw1, (HIDDEN_DIM, STATE_DIM), dtype=jnp.float32) * 0.1
    b1 = jax.random.normal(kb1, (HIDDEN_DIM,), dtype=jnp.float32) * 0.1
    w2 = jax.random.normal(kw2, (ACTION_DIM, HIDDEN_DIM), dtype=jnp.float32) * 0.1
    b2 = jax.random.normal(kb2, (ACTION_DIM,), dtype=jnp.float32) * 0.1

    ref = jnp.maximum(x @ w1.T + b1, 0.0) @ w2.T + b2

    # 1) f32 path, 2 grid steps (tb = 128) — tight tolerance.
    out = jax.block_until_ready(dqn_forward(x, w1, b1, w2, b2, block_b=128))
    assert out.shape == (B, ACTION_DIM)
    assert jnp.allclose(out, ref, atol=1e-5, rtol=1e-5), "f32 mismatch vs reference"

    # 2) bf16 inputs, f32 accumulation (v6e/v7x MXU-friendly) — loose tolerance.
    out_bf16 = jax.block_until_ready(
        dqn_forward(x, w1, b1, w2, b2, compute_dtype=jnp.bfloat16))
    assert out_bf16.shape == (B, ACTION_DIM)
    assert jnp.allclose(out_bf16, ref, atol=5e-2, rtol=5e-2), "bf16 mismatch vs reference"

    # 3) Tiny-batch path (tile == full batch, no 128 alignment needed).
    out_small = jax.block_until_ready(dqn_forward(x[:8], w1, b1, w2, b2))
    assert jnp.allclose(out_small, ref[:8], atol=1e-5, rtol=1e-5), "small-batch mismatch"

    print("KERNEL_OK")
</pallas_src>

<mosaic_0001>
module attributes {stable_mosaic.version = 11 : i64} {
  func.func @dqn_kernel(%arg0: i32, %arg1: memref<16x128xf32, #tpu.memory_space<vmem>>, %arg2: memref<256x16xf32, #tpu.memory_space<vmem>>, %arg3: memref<256x1xf32, #tpu.memory_space<vmem>>, %arg4: memref<8x256xf32, #tpu.memory_space<vmem>>, %arg5: memref<8x1xf32, #tpu.memory_space<vmem>>, %arg6: memref<8x128xf32, #tpu.memory_space<vmem>>) attributes {dimension_semantics = [#tpu.dimension_semantics<parallel>], iteration_bounds = array<i64: 2>, scalar_prefetch = 0 : i64, scratch_operands = 0 : i64, tpu.core_type = #tpu.core_type<tc>, window_params = [{transform_indices = @transform_0, window_bounds = array<i64: 16, 128>}, {pipeline_mode = #tpu.pipeline_mode<synchronous>, transform_indices = @transform_1, window_bounds = array<i64: 256, 16>}, {pipeline_mode = #tpu.pipeline_mode<synchronous>, transform_indices = @transform_2, window_bounds = array<i64: 256, 1>}, {pipeline_mode = #tpu.pipeline_mode<synchronous>, transform_indices = @transform_3, window_bounds = array<i64: 8, 256>}, {pipeline_mode = #tpu.pipeline_mode<synchronous>, transform_indices = @transform_4, window_bounds = array<i64: 8, 1>}, {transform_indices = @transform_5, window_bounds = array<i64: 8, 128>}]} {
    %c0 = arith.constant 0 : index
    %c0_0 = arith.constant 0 : index
    %0 = vector.load %arg2[%c0, %c0_0] : memref<256x16xf32, #tpu.memory_space<vmem>>, vector<256x16xf32>
    %c0_1 = arith.constant 0 : index
    %c0_2 = arith.constant 0 : index
    %1 = vector.load %arg1[%c0_1, %c0_2] : memref<16x128xf32, #tpu.memory_space<vmem>>, vector<16x128xf32>
    %cst = arith.constant dense<0.000000e+00> : vector<256x128xf32>
    %2 = tpu.matmul %0, %1, %cst {dimension_numbers = #tpu.dot_dimension_numbers<[1], [0], [0], [1], [0, 0, 1, 1], [], []>} : vector<256x16xf32>, vector<16x128xf32>, vector<256x128xf32> -> vector<256x128xf32>
    %c0_3 = arith.constant 0 : index
    %c0_4 = arith.constant 0 : index
    %3 = vector.load %arg3[%c0_3, %c0_4] : memref<256x1xf32, #tpu.memory_space<vmem>>, vector<256x1xf32>
    %4 = vector.broadcast %3 : vector<256x1xf32> to vector<256x128xf32>
    %5 = arith.addf %2, %4 : vector<256x128xf32>
    %cst_5 = arith.constant 0.000000e+00 : f32
    %6 = vector.broadcast %cst_5 : f32 to vector<256x128xf32>
    %7 = arith.maximumf %5, %6 : vector<256x128xf32>
    %c0_6 = arith.constant 0 : index
    %c0_7 = arith.constant 0 : index
    %8 = vector.load %arg4[%c0_6, %c0_7] : memref<8x256xf32, #tpu.memory_space<vmem>>, vector<8x256xf32>
    %cst_8 = arith.constant dense<0.000000e+00> : vector<8x128xf32>
    %9 = tpu.matmul %8, %7, %cst_8 {dimension_numbers = #tpu.dot_dimension_numbers<[1], [0], [0], [1], [0, 0, 1, 1], [], []>} : vector<8x256xf32>, vector<256x128xf32>, vector<8x128xf32> -> vector<8x128xf32>
    %c0_9 = arith.constant 0 : index
    %c0_10 = arith.constant 0 : index
    %10 = vector.load %arg5[%c0_9, %c0_10] : memref<8x1xf32, #tpu.memory_space<vmem>>, vector<8x1xf32>
    %11 = vector.broadcast %10 : vector<8x1xf32> to vector<8x128xf32>
    %12 = arith.addf %9, %11 : vector<8x128xf32>
    %c0_11 = arith.constant 0 : index
    %c0_12 = arith.constant 0 : index
    %13 = vector.load %arg6[%c0_11, %c0_12] : memref<8x128xf32, #tpu.memory_space<vmem>>, vector<8x128xf32>
    tpu.vector_store %arg6[%c0_11, %c0_12], %12 {strides = array<i32>} : memref<8x128xf32, #tpu.memory_space<vmem>>, vector<8x128xf32>,
    return
  }
  func.func @transform_0(%arg0: i32) -> (i32, i32) {
    %c0_i32 = arith.constant 0 : i32
    %c0_i32_0 = arith.constant 0 : i32
    return %c0_i32, %arg0 : i32, i32
  }
  func.func @transform_1(%arg0: i32) -> (i32, i32) {
    %c0_i32 = arith.constant 0 : i32
    %c0_i32_0 = arith.constant 0 : i32
    %c0_i32_1 = arith.constant 0 : i32
    return %c0_i32, %c0_i32_0 : i32, i32
  }
  func.func @transform_2(%arg0: i32) -> (i32, i32) {
    %c0_i32 = arith.constant 0 : i32
    %c0_i32_0 = arith.constant 0 : i32
    %c0_i32_1 = arith.constant 0 : i32
    return %c0_i32, %c0_i32_0 : i32, i32
  }
  func.func @transform_3(%arg0: i32) -> (i32, i32) {
    %c0_i32 = arith.constant 0 : i32
    %c0_i32_0 = arith.constant 0 : i32
    %c0_i32_1 = arith.constant 0 : i32
    return %c0_i32, %c0_i32_0 : i32, i32
  }
  func.func @transform_4(%arg0: i32) -> (i32, i32) {
    %c0_i32 = arith.constant 0 : i32
    %c0_i32_0 = arith.constant 0 : i32
    %c0_i32_1 = arith.constant 0 : i32
    return %c0_i32, %c0_i32_0 : i32, i32
  }
  func.func @transform_5(%arg0: i32) -> (i32, i32) {
    %c0_i32 = arith.constant 0 : i32
    %c0_i32_0 = arith.constant 0 : i32
    return %c0_i32, %arg0 : i32, i32
  }
}

</mosaic_0001>

<bundles_post_ra>
// kernel: tpu_custom_call.1
= control target key start
LH: loop header
LB: loop body
LE: loop exit
PB: predicated region body
PF: predicated region fallthrough
CT: control target
= control target key end

     0   :  { %10 = vsyncpa [#allocation4], 0  ;;  %s1448_s0 = inlined_call_operand.vmem [shape: f32[16,256], index: 0, kind: input, shape index: {}]   ;;  %s1449_s1 = inlined_call_operand.vmem [shape: f32[256,16], index: 1, kind: input, shape index: {}]   ;;  %s1450_s2 = inlined_call_operand.vmem [shape: f32[256,1], index: 2, kind: input, shape index: {}]   ;;  %s1451_s3 = inlined_call_operand.vmem [shape: f32[8,256], index: 3, kind: input, shape index: {}]   ;;  %s1452_s4 = inlined_call_operand.vmem [shape: f32[8,1], index: 4, kind: input, shape index: {}]   ;;  %s1453_s5 = inlined_call_operand.hbm [shape: f32[8,256], index: 5, kind: output, shape index: {}]  }
   0x1   :  { %12 = vsyncpa [#allocation4 + $0x1], 0  ;;  %s1048_s18 = smov 0   ;;  %s1050_s19 = smov 0  }
   0x2   :  { %s1052_s20 = smov 0   ;;  %s1054_s21 = smov 0  }
   0x3 LB: > { %s859_s22 = sadd.s32 4294967295, %s1015_s21   ;;  %s860_s23 = sadd.s32 4294967294, %s1015_s21   ;;  %s1015_s21 = sphi %s1054_s21, %s1459_s21   ;;  %s1011_s20 = sphi %s1052_s20, %s1458_s20   ;;  %s1007_s19 = sphi %s1050_s19, %s1457_s19   ;;  %s1003_s18 = sphi %s1048_s18, %s1456_s18  }
   0x4   : > { %s1071_s24 = sadd.s32 1, %s1015_s21   ;;  %s25_s25 = sadd.s32 1, %s1011_s20 }
   0x5   : > { %s22_s26 = ssub.s32 %s1015_s21, %s1071_s24  ;;  %p32_p0 = scmp.ne.s32.totalorder %s1011_s20, %s1007_s19 }
   0x6   : > { %p23_p1 = scmp.eq.s32.totalorder %s22_s26, 0  ;;  %p33_p2 = scmp.eq.s32.totalorder %s1015_s21, 0 }
   0x7   : > { %p146_p3 = scmp.eq.s32.totalorder %s859_s22, 1  ;;  %p151_p4 = scmp.ne.s32.totalorder %s1007_s19, %s1003_s18 }
   0x8   : > { %s1084_s27 = scalar_select %p23_p1, %s1011_s20, %s25_s25  }
   0x9   : > { %p34_p5 = por %p33_p2, %p32_p0  ;;  %p1086_p6 = por %p146_p3, %p32_p0 }
   0xa   : > { %p152_p7 = scmp.eq.s32.totalorder %s860_s23, 1  ;;  %p862_p9 = scmp.ge.s32.totalorder %s1015_s21, 2 }
   0xc   : > { %p1090_p8 = por %p152_p7, %p151_p4  ;;  %180 = sbr.rel (%p862_p9) target bundleno = 23 (0x17), region = 32 }
  0x11   : > { %183 = sbr.rel (!%p34_p5) target bundleno = 23 (0x17), region = 36  ;;  %s185_s30 = sand.u32 (%p34_p5), 1, %s1011_s20  }
  0x12   : > { %s864_s6 = sshll.u32 (%p34_p5), %s1015_s21, 3  ;;  %s863_s7 = sshll.u32 (%p34_p5), %s185_s30, 4 }
  0x13   : > { %s189_s10 = scalar_lea.vmem (%p34_p5), %s1448_s0, %s864_s6  ;;  %s187_s11 = scalar_lea.vmem (%p34_p5), [#allocation2], %s863_s7 }
  0x14   : > { %v220_v0 = vld [vmem:[%s189_s10] sm:$0xff] (%p34_p5)  ;;  %v222_v1 = vld [vmem:[%s189_s10 + $0x10] sm:$0xff] (%p34_p5) }
  0x15   : > { %221 = vst [vmem:[%s187_s11] sm:$0xff] (%p34_p5), %v220_v0 }
  0x16   : > { %223 = vst [vmem:[%s187_s11 + $0x8] sm:$0xff] %v222_v1 }
  0x17 PF: > { %p865_p10 = scmp.ge.s32.totalorder %s1015_s21, 1  ;;  %p228_p11 = scmp.lt.s32.totalorder %s1015_s21, 3 }
  0x19   : > { %p229_p12 = pnand %p865_p10, %p228_p11 }
  0x1a   : > { %s1111_s16 = sand.u32 (!%p229_p12), 1, %s1007_s19   ;;  %s901_s14 = sshll.u32 (!%p229_p12), %s859_s22, 3 }
  0x1b   : > { %232 = sbr.rel (%p229_p12) target bundleno = 415 (0x19f), region = 74  ;;  %s866_s17 = sshll.u32 (!%p229_p12), %s1111_s16, 4 }
  0x1c   : > { %s237_s26 = scalar_lea.vmem (!%p229_p12), [#allocation2], %s866_s17  ;;  %s867_s13 = sshll.u32 (!%p229_p12), %s1111_s16, 3 }
  0x1d   : > { %s790_s23 = scalar_lea.hbm (!%p229_p12), %s1453_s5, %s901_s14  ;;  %s261_s25 = scalar_lea.vmem (!%p229_p12), [#allocation3], %s867_s13 }
  0x1e   : > { %s794_s30 = sshll.u32 (!%p229_p12), %s790_s23, 4  ;;  %s780_s6 = scalar_lea.sflag (!%p229_p12), [#allocation4], %s1111_s16  ;;  %s795_s30 = int_to_ptr.hbm [resolvable:$true] %s794_s30 }
  0x1f   : > { %s967_s7 = sshra.s32 (!%p229_p12), %s795_s30, 4  ;;  %s973_s10 = scalar_lea.hbm (!%p229_p12), %s1453_s5, 16  ;;  %s968_s7 = int_to_ptr.hbm [resolvable:$true] %s967_s7 }
  0x20   : > { %v327_v2 = vld [vmem:[%s1450_s2 + $0xf8] sm:$0xff]  ;;  %v1017_v4 = vmov 0   ;;  %v310_v5 = vld [vmem:[%s1450_s2 + $0x70] sm:$0xff]  ;;  %v262_v8 = vld [vmem:[%s1449_s1] sm:$0xff]  ;;  %vm488_vm0 = vcmask 130048   ;;  %s969_s22 = scalar_lea.hbm %s968_s7, 8  ;;  %p974_p2 = scmp.lt.s32.totalorder %s968_s7, %s1453_s5 }
  0x21   : > { %v311_v3 = vld [vmem:[%s1450_s2 + $0x78] sm:$0xff]  ;;  %951 = vset.pattern.permute.xlu1 %v1017_v4  ;;  %950 = vset.pattern.permute.xlu0 %v1017_v4  ;;  %v294_v7 = vld [vmem:[%s237_s26] sm:$0xff]  ;;  %v325_v12 = vld [vmem:[%s1450_s2 + $0xe8] sm:$0xff]  ;;  %p970_p13 = scmp.ne.s32.totalorder %s968_s7, %s969_s22  ;;  %p975_p3 = scmp.lt.s32.totalorder %s973_s10, %s969_s22 }
  0x22   : > { %485 = vperm.xlu0 %950, %v327_v2   ;;  %405 = vperm.xlu1 %951, %v311_v3   ;;  %v295_v6 = vld [vmem:[%s237_s26 + $0x8] sm:$0xff]  ;;  %v284_v9 = vld [vmem:[%s1449_s1 + $0xb0] sm:$0xff]  ;;  %v324_v14 = vld [vmem:[%s1450_s2 + $0xe0] sm:$0xff]  ;;  %s792_s26 = sshll.u32 %s261_s25, 4  ;;  %s793_s26 = int_to_ptr.vmem [resolvable:$true] %s792_s26 }
  0x23   : > { %952 = vset.pattern.permute.xlu2 %v1017_v4  ;;  %599 = vmatpush.msra.mxu0 %v295_v6  ;;  %v277_v10 = vld [vmem:[%s1449_s1 + $0x78] sm:$0xff]  ;;  %v326_v11 = vld [vmem:[%s1450_s2 + $0xf0] sm:$0xff]  ;;  %v263_v15 = vld [vmem:[%s1449_s1 + $0x8] sm:$0xff]  ;;  %p971_p0 = pnand %p970_p13, %p1086_p6  ;;  %p976_p4 = por %p975_p3, %p974_p2 }
  0x24   : > { %906 = vmatpush.msra.mxu3 %v295_v6  ;;  %905 = vmatpush.msra.mxu2 %v295_v6  ;;  %v273_v13 = vld [vmem:[%s1449_s1 + $0x58] sm:$0xff]  ;;  %v278_v17 = vld [vmem:[%s1449_s1 + $0x80] sm:$0xff]  ;;  %v309_v19 = vld [vmem:[%s1450_s2 + $0x68] sm:$0xff] }
  0x25   : > { %400 = vperm.xlu2 %952, %v310_v5   ;;  %600 = vmatpush.msra.mxu0 %v294_v7  ;;  %v285_v16 = vld [vmem:[%s1449_s1 + $0xb8] sm:$0xff]  ;;  %v274_v20 = vld [vmem:[%s1449_s1 + $0x60] sm:$0xff]  ;;  %v264_v22 = vld [vmem:[%s1449_s1 + $0x10] sm:$0xff]  ;;  %p972_p1 = pneg %p971_p0 }
  0x26   : > { %909 = vmatpush.msra.mxu3 %v294_v7  ;;  %868 = vmatmul.msk.f32.vlgmr.msra.gmra.mxu0 %vm488_vm0, %v262_v8  ;;  %v323_v18 = vld [vmem:[%s1450_s2 + $0xd8] sm:$0xff]  ;;  %v308_v21 = vld [vmem:[%s1450_s2 + $0x60] sm:$0xff]  ;;  %v279_v24 = vld [vmem:[%s1449_s1 + $0x88] sm:$0xff] }
  0x27   : > { %890 = vmatmul.msk.f32.vlgmr.msra.gmra.mxu3 %vm488_vm0, %v284_v9  ;;  %908 = vmatpush.msra.mxu2 %v294_v7  ;;  %v286_v23 = vld [vmem:[%s1449_s1 + $0xc0] sm:$0xff]  ;;  %v322_v25 = vld [vmem:[%s1450_s2 + $0xd0] sm:$0xff]  ;;  %v307_v26 = vld [vmem:[%s1450_s2 + $0x58] sm:$0xff]  ;;  %p977_p5 = pnand %p976_p4, %p972_p1 }
  0x28   : > { %904 = vmatpush.msra.mxu1 %v295_v6  ;;  %883 = vmatmul.msk.f32.vlgmr.msra.gmra.mxu2 %vm488_vm0, %v277_v10  ;;  %v275_v27 = vld [vmem:[%s1449_s1 + $0x68] sm:$0xff]  ;;  %v265_v29 = vld [vmem:[%s1449_s1 + $0x18] sm:$0xff]  ;;  %v280_v31 = vld [vmem:[%s1449_s1 + $0x90] sm:$0xff] }
  0x29   : > { %v321_v28 = vld [vmem:[%s1450_s2 + $0xc8] sm:$0xff]  ;;  %v320_v32 = vld [vmem:[%s1450_s2 + $0xc0] sm:$0xff]  ;;  %v306_v33 = vld [vmem:[%s1450_s2 + $0x50] sm:$0xff] }
  0x2a   : > { %480 = vperm.xlu0 %950, %v326_v11   ;;  %475 = vperm.xlu1 %951, %v325_v12   ;;  %v287_v30 = vld [vmem:[%s1449_s1 + $0xc8] sm:$0xff]  ;;  %v276_v34 = vld [vmem:[%s1449_s1 + $0x70] sm:$0xff]  ;;  %v266_v36 = vld [vmem:[%s1449_s1 + $0x20] sm:$0xff] }
  0x2b   : > { %907 = vmatpush.msra.mxu1 %v294_v7  ;;  %v305_v35 = vld [vmem:[%s1450_s2 + $0x48] sm:$0xff]  ;;  %v288_v37 = vld [vmem:[%s1449_s1 + $0xd0] sm:$0xff]  ;;  %v281_v38 = vld [vmem:[%s1449_s1 + $0x98] sm:$0xff] }
  0x2c   : > { %879 = vmatmul.msk.f32.vlgmr.msra.gmra.mxu1 %vm488_vm0, %v273_v13  ;;  %v319_v39 = vld [vmem:[%s1450_s2 + $0xb8] sm:$0xff]  ;;  %v304_v40 = vld [vmem:[%s1450_s2 + $0x40] sm:$0xff]  ;;  %v318_v41 = vld [vmem:[%s1450_s2 + $0xb0] sm:$0xff] }
  0x2d   : > { %470 = vperm.xlu2 %952, %v324_v14   ;;  %v267_v42 = vld [vmem:[%s1449_s1 + $0x28] sm:$0xff]  ;;  %v289_v43 = vld [vmem:[%s1449_s1 + $0xd8] sm:$0xff]  ;;  %v282_v44 = vld [vmem:[%s1449_s1 + $0xa0] sm:$0xff] }
  0x2e   : > { %869 = vmatmul.msk.f32.gmra.mxu0 %vm488_vm0, %v263_v15  ;;  %v317_v45 = vld [vmem:[%s1450_s2 + $0xa8] sm:$0xff]  ;;  %v303_v46 = vld [vmem:[%s1450_s2 + $0x38] sm:$0xff]  ;;  %v302_v47 = vld [vmem:[%s1450_s2 + $0x30] sm:$0xff] }
  0x2f   : > { %891 = vmatmul.msk.f32.gmra.mxu3 %vm488_vm0, %v285_v16  ;;  %v268_v48 = vld [vmem:[%s1449_s1 + $0x30] sm:$0xff]  ;;  %v290_v49 = vld [vmem:[%s1449_s1 + $0xe0] sm:$0xff]  ;;  %v283_v50 = vld [vmem:[%s1449_s1 + $0xa8] sm:$0xff] }
  0x30   : > { %884 = vmatmul.msk.f32.gmra.mxu2 %vm488_vm0, %v278_v17  ;;  %v316_v51 = vld [vmem:[%s1450_s2 + $0xa0] sm:$0xff]  ;;  %v301_v52 = vld [vmem:[%s1450_s2 + $0x28] sm:$0xff]  ;;  %v315_v53 = vld [vmem:[%s1450_s2 + $0x98] sm:$0xff] }
  0x31   : > { %v269_v54 = vld [vmem:[%s1449_s1 + $0x38] sm:$0xff]  ;;  %v291_v55 = vld [vmem:[%s1449_s1 + $0xe8] sm:$0xff]  ;;  %v314_v56 = vld [vmem:[%s1450_s2 + $0x90] sm:$0xff] }
  0x32   : > { %465 = vperm.xlu1 %951, %v323_v18   ;;  %395 = vperm.xlu0 %950, %v309_v19   ;;  %v300_v57 = vld [vmem:[%s1450_s2 + $0x20] sm:$0xff]  ;;  %v299_v58 = vld [vmem:[%s1450_s2 + $0x18] sm:$0xff]  ;;  %v292_v60 = vld [vmem:[%s1449_s1 + $0xf0] sm:$0xff] }
  0x33   : > { %v270_v59 = vld [vmem:[%s1449_s1 + $0x40] sm:$0xff]  ;;  %v313_v61 = vld [vmem:[%s1450_s2 + $0x88] sm:$0xff]  ;;  %v298_v62 = vld [vmem:[%s1450_s2 + $0x10] sm:$0xff] }
  0x34   : > { %880 = vmatmul.msk.f32.gmra.mxu1 %vm488_vm0, %v274_v20  ;;  %v312_v63 = vld [vmem:[%s1450_s2 + $0x80] sm:$0xff]  ;;  %v271_v0 = vld [vmem:[%s1449_s1 + $0x48] sm:$0xff]  ;;  %v293_v1 = vld [vmem:[%s1449_s1 + $0xf8] sm:$0xff] }
  0x35   : > { %390 = vperm.xlu2 %952, %v308_v21   ;;  %v297_v2 = vld [vmem:[%s1450_s2 + $0x8] sm:$0xff]  ;;  %v296_v3 = vld [vmem:[%s1450_s2] sm:$0xff]  ;;  %v272_v5 = vld [vmem:[%s1449_s1 + $0x50] sm:$0xff] }
  0x36   : > { %870 = vmatmul.msk.f32.gmra.mxu0 %vm488_vm0, %v264_v22  ;;  %v732_v4 = vld [vmem:[%s1452_s4] sm:$0xff] }
  0x37   : > { %892 = vmatmul.msk.f32.gmra.mxu3 %vm488_vm0, %v286_v23 }
  0x38   : > { %885 = vmatmul.msk.f32.gmra.mxu2 %vm488_vm0, %v279_v24 }
  0x3a   : > { %460 = vperm.xlu0 %950, %v322_v25   ;;  %385 = vperm.xlu1 %951, %v307_v26  }
  0x3c   : > { %881 = vmatmul.msk.f32.gmra.mxu1 %vm488_vm0, %v275_v27 }
  0x3d   : > { %455 = vperm.xlu2 %952, %v321_v28  }
  0x3e   : > { %871 = vmatmul.msk.f32.gmra.mxu0 %vm488_vm0, %v265_v29 }
  0x3f   : > { %893 = vmatmul.msk.f32.gmra.mxu3 %vm488_vm0, %v287_v30 }
  0x40   : > { %886 = vmatmul.msk.f32.gmra.mxu2 %vm488_vm0, %v280_v31 }
  0x42   : > { %450 = vperm.xlu1 %951, %v320_v32   ;;  %380 = vperm.xlu0 %950, %v306_v33  }
  0x44   : > { %882 = vmatmul.msk.f32.gmra.mxu1 %vm488_vm0, %v276_v34 }
  0x45   : > { %375 = vperm.xlu2 %952, %v305_v35  }
  0x46   : > { %872 = vmatmul.msk.f32.gmra.mxu0 %vm488_vm0, %v266_v36 }
  0x47   : > { %894 = vmatmul.msk.f32.gmra.mxu3 %vm488_vm0, %v288_v37 }
  0x48   : > { %887 = vmatmul.msk.f32.gmra.mxu2 %vm488_vm0, %v281_v38 }
  0x4a   : > { %445 = vperm.xlu0 %950, %v319_v39   ;;  %370 = vperm.xlu1 %951, %v304_v40  }
  0x4d   : > { %440 = vperm.xlu2 %952, %v318_v41  }
  0x4e   : > { %873 = vmatmul.msk.f32.gmra.mxu0 %vm488_vm0, %v267_v42 }
  0x4f   : > { %895 = vmatmul.msk.f32.gmra.mxu3 %vm488_vm0, %v289_v43 }
  0x50   : > { %888 = vmatmul.msk.f32.gmra.mxu2 %vm488_vm0, %v282_v44 }
  0x52   : > { %435 = vperm.xlu1 %951, %v317_v45   ;;  %365 = vperm.xlu0 %950, %v303_v46  }
  0x55   : > { %360 = vperm.xlu2 %952, %v302_v47  }
  0x56   : > { %874 = vmatmul.msk.f32.gmra.mxu0 %vm488_vm0, %v268_v48 }
  0x57   : > { %896 = vmatmul.msk.f32.gmra.mxu3 %vm488_vm0, %v290_v49 }
  0x58   : > { %889 = vmatmul.msk.f32.gmra.mxu2 %vm488_vm0, %v283_v50 }
  0x5a   : > { %430 = vperm.xlu0 %950, %v316_v51   ;;  %355 = vperm.xlu1 %951, %v301_v52  }
  0x5d   : > { %425 = vperm.xlu2 %952, %v315_v53  }
  0x5e   : > { %875 = vmatmul.msk.f32.gmra.mxu0 %vm488_vm0, %v269_v54 }
  0x5f   : > { %897 = vmatmul.msk.f32.gmra.mxu3 %vm488_vm0, %v291_v55 }
  0x62   : > { %420 = vperm.xlu1 %951, %v314_v56   ;;  %350 = vperm.xlu0 %950, %v300_v57  }
  0x65   : > { %345 = vperm.xlu2 %952, %v299_v58  }
  0x66   : > { %876 = vmatmul.msk.f32.gmra.mxu0 %vm488_vm0, %v270_v59 }
  0x67   : > { %898 = vmatmul.msk.f32.gmra.mxu3 %vm488_vm0, %v292_v60 }
  0x6a   : > { %415 = vperm.xlu0 %950, %v313_v61   ;;  %340 = vperm.xlu1 %951, %v298_v62  }
  0x6d   : > { %410 = vperm.xlu2 %952, %v312_v63  }
  0x6e   : > { %877 = vmatmul.msk.f32.gmra.mxu0 %vm488_vm0, %v271_v0 }
  0x6f   : > { %899 = vmatmul.msk.f32.gmra.mxu3 %vm488_vm0, %v293_v1 }
  0x72   : > { %335 = vperm.xlu0 %950, %v297_v2   ;;  %330 = vperm.xlu1 %951, %v296_v3  }
  0x75   : > { %735 = vperm.xlu2 %952, %v732_v4  }
  0x76   : > { %878 = vmatmul.msk.f32.gmra.mxu0 %vm488_vm0, %v272_v5 }
  0x7f   : > { %v401_v13 = vpop.permute.xlu2 %400 }
  0x87   : > { %v471_v23 = vpop.permute.xlu2 %470 }
  0x8f   : > { %v391_v30 = vpop.permute.xlu2 %390 }
  0x94   : > { %v1335_v6 = vpop.permute.xlu0 %485  ;;  %v406_v7 = vpop.permute.xlu1 %405 }
  0x97   : > { %v456_v45 = vpop.permute.xlu2 %455 }
  0x9c   : > { %v1339_v9 = vpop.permute.xlu0 %480  ;;  %v1343_v12 = vpop.permute.xlu1 %475 }
  0x9f   : > { %v376_v51 = vpop.permute.xlu2 %375 }
  0xa3   : > { %v1337_v8 = vpop.f32.mrf.mxu0 }
  0xa4   : > { %v396_v20 = vpop.permute.xlu0 %395  ;;  %v1349_v21 = vpop.permute.xlu1 %465 }
  0xa7   : > { %v441_v58 = vpop.permute.xlu2 %440 }
  0xa9   : > { %v635_v10 = vpop.f32.mrf.mxu1 }
  0xaa   : > { %v1341_v11 = vpop.f32.mrf.mxu3 }
  0xab   : > { %v1345_v14 = vpop.f32.mrf.mxu0  ;;  %v647_v15 = vpop.f32.mrf.mxu2 }
  0xac   : > { %v648_v16 = vadd.f32 %v647_v15, %v406_v7  ;;  %v1355_v26 = vpop.permute.xlu0 %460  ;;  %v386_v28 = vpop.permute.xlu1 %385 }
  0xad   : > { %v636_v35 = vadd.f32 %v635_v10, %v386_v28 }
  0xae   : > { %v713_v17 = vmax.f32 %v648_v16, 0.0 }
  0xaf   : > { %v709_v41 = vmax.f32 %v636_v35, 0.0  ;;  %v361_v0 = vpop.permute.xlu2 %360 }
  0xb0   : > { %738 = vmatpush.msrb.mxu1 %v713_v17 }
  0xb1   : > { %v638_v18 = vpop.f32.mrf.mxu1 }
  0xb2   : > { %v1347_v19 = vpop.f32.mrf.mxu3  ;;  %v639_v33 = vadd.f32 %v638_v18, %v391_v30 }
  0xb3   : > { %v1351_v22 = vpop.f32.mrf.mxu0  ;;  %v1365_v46 = vpop.f32.mrf.mxu2 }
  0xb4   : > { %v710_v39 = vmax.f32 %v639_v33, 0.0  ;;  %v381_v40 = vpop.permute.xlu0 %380  ;;  %v1363_v42 = vpop.permute.xlu1 %450 }
  0xb9   : > { %v641_v24 = vpop.f32.mrf.mxu1 }
  0xba   : > { %v1353_v25 = vpop.f32.mrf.mxu3  ;;  %v642_v29 = vadd.f32 %v641_v24, %v396_v20  ;;  %v426_v20 = vpop.permute.xlu2 %425 }
  0xbb   : > { %v1357_v27 = vpop.f32.mrf.mxu0  ;;  %v1369_v52 = vpop.f32.mrf.mxu2 }
  0xbc   : > { %v711_v36 = vmax.f32 %v642_v29, 0.0  ;;  %v1367_v47 = vpop.permute.xlu0 %445  ;;  %v371_v49 = vpop.permute.xlu1 %370 }
  0xc1   : > { %v644_v31 = vpop.f32.mrf.mxu1 }
  0xc2   : > { %v1359_v32 = vpop.f32.mrf.mxu3  ;;  %v645_v34 = vadd.f32 %v644_v31, %v401_v13 }
  0xc3   : > { %v1361_v38 = vpop.f32.mrf.mxu0  ;;  %v1373_v59 = vpop.f32.mrf.mxu2 }
  0xc4   : > { %v712_v37 = vmax.f32 %v645_v34, 0.0  ;;  %v366_v54 = vpop.permute.xlu0 %365  ;;  %v1371_v55 = vpop.permute.xlu1 %435 }
  0xc6   : > { %739 = vmatpush.msrb.mxu1 %v712_v37 }
  0xc8   : > { %740 = vmatpush.msrb.mxu1 %v711_v36 }
  0xca   : > { %v680_v43 = vpop.f32.mrf.mxu3  ;;  %741 = vmatpush.msrb.mxu1 %v710_v39 }
  0xcb   : > { %v617_v44 = vpop.f32.mrf.mxu0  ;;  %v1377_v2 = vpop.f32.mrf.mxu2 }
  0xcc   : > { %742 = vmatpush.msrb.mxu1 %v709_v41  ;;  %v1375_v60 = vpop.permute.xlu0 %430  ;;  %v356_v62 = vpop.permute.xlu1 %355 }
  0xd2   : > { %v683_v48 = vpop.f32.mrf.mxu3 }
  0xd3   : > { %v620_v50 = vpop.f32.mrf.mxu0  ;;  %v662_v29 = vpop.f32.mrf.mxu2  ;;  %v684_v33 = vadd.f32 %v683_v48, %v1349_v21  ;;  %v618_v21 = vadd.f32 %v617_v44, %v356_v62 }
  0xd4   : > { %v351_v3 = vpop.permute.xlu0 %350  ;;  %v1379_v4 = vpop.permute.xlu1 %420 }
  0xd5   : > { %v725_v41 = vmax.f32 %v684_v33, 0.0 }
  0xda   : > { %v686_v53 = vpop.f32.mrf.mxu3 }
  0xdb   : > { %v623_v56 = vpop.f32.mrf.mxu0  ;;  %v687_v24 = vadd.f32 %v686_v53, %v471_v23  ;;  %v621_v23 = vadd.f32 %v620_v50, %v361_v0  ;;  %v672_v50 = vadd.f32 %v1347_v19, %v1367_v47  ;;  %v663_v0 = vadd.f32 %v662_v29, %v1375_v60  ;;  %v730_v60 = vld [vmem:[%s1451_s3] sm:$0xff] }
  0xdc   : > { %v1385_v34 = vpop.permute.xlu0 %415  ;;  %v341_v37 = vpop.permute.xlu1 %340 }
  0xdd   : > { %v726_v36 = vmax.f32 %v687_v24, 0.0 }
  0xe2   : > { %v689_v57 = vpop.f32.mrf.mxu3 }
  0xe3   : > { %v626_v61 = vpop.f32.mrf.mxu0  ;;  %v690_v13 = vadd.f32 %v689_v57, %v1343_v12  ;;  %v681_v12 = vadd.f32 %v680_v43, %v1355_v26  ;;  %v615_v26 = vadd.f32 %v1361_v38, %v351_v3  ;;  %v704_v43 = vmax.f32 %v621_v23, 0.0 }
  0xe4   : > { %v627_v30 = vadd.f32 %v626_v61, %v371_v49  ;;  %v675_v49 = vadd.f32 %v1353_v25, %v1363_v42  ;;  %v336_v42 = vpop.permute.xlu0 %335  ;;  %v609_v38 = vadd.f32 %v1351_v22, %v341_v37  ;;  %v721_v61 = vmax.f32 %v672_v50, 0.0  ;;  %v331_v47 = vpop.permute.xlu1 %330 }
  0xe5   : > { %v702_v57 = vmax.f32 %v615_v26, 0.0  ;;  %v660_v22 = vadd.f32 %v1377_v2, %v426_v20 }
  0xe6   : > { %v706_v39 = vmax.f32 %v627_v30, 0.0  ;;  %v722_v25 = vmax.f32 %v675_v49, 0.0 }
  0xea   : > { %v692_v63 = vpop.f32.mrf.mxu3 }
  0xeb   : > { %v629_v1 = vpop.f32.mrf.mxu0  ;;  %v693_v7 = vadd.f32 %v692_v63, %v1339_v9  ;;  %v727_v9 = vmax.f32 %v690_v13, 0.0  ;;  %v606_v63 = vadd.f32 %v1345_v14, %v336_v42 }
  0xec   : > { %v630_v17 = vadd.f32 %v629_v1, %v376_v51  ;;  %v724_v51 = vmax.f32 %v681_v12, 0.0 }
  0xed   : > { %v728_v28 = vmax.f32 %v693_v7, 0.0  ;;  %v699_v3 = vmax.f32 %v606_v63, 0.0  ;;  %v717_v7 = vmax.f32 %v660_v22, 0.0 }
  0xee   : > { %v707_v35 = vmax.f32 %v630_v17, 0.0 }
  0xf2   : > { %v695_v5 = vpop.f32.mrf.mxu3 }
  0xf3   : > { %v696_v10 = vadd.f32 %v695_v5, %v1335_v6  ;;  %v632_v16 = vpop.f32.mrf.mxu0  ;;  %v624_v6 = vadd.f32 %v623_v56, %v366_v54  ;;  %v346_v54 = vpop.permute.xlu2 %345  ;;  %v669_v56 = vadd.f32 %v1341_v11, %v441_v58  ;;  %v700_v11 = vmax.f32 %v609_v38, 0.0 }
  0xf4   : > { %v633_v18 = vadd.f32 %v632_v16, %v381_v40  ;;  %v678_v40 = vadd.f32 %v1359_v32, %v456_v45  ;;  %v703_v32 = vmax.f32 %v618_v21, 0.0  ;;  %v612_v44 = vadd.f32 %v1357_v27, %v346_v54  ;;  %v665_v45 = vpop.f32.mrf.mxu2 }
  0xf5   : > { %v729_v15 = vmax.f32 %v696_v10, 0.0  ;;  %v705_v48 = vmax.f32 %v624_v6, 0.0  ;;  %v666_v19 = vadd.f32 %v665_v45, %v1371_v55  ;;  %v720_v27 = vmax.f32 %v669_v56, 0.0 }
  0xf6   : > { %v708_v31 = vmax.f32 %v633_v18, 0.0  ;;  %v723_v53 = vmax.f32 %v678_v40, 0.0  ;;  %v701_v62 = vmax.f32 %v612_v44, 0.0  ;;  %v603_v58 = vadd.f32 %v1337_v8, %v331_v47 }
  0xf7   : > { %758 = vmatpush.msrb.mxu2 %v729_v15  ;;  %v719_v1 = vmax.f32 %v666_v19, 0.0  ;;  %v657_v55 = vadd.f32 %v1373_v59, %v1379_v4  ;;  %v718_v5 = vmax.f32 %v663_v0, 0.0  ;;  %v654_v8 = vadd.f32 %v1369_v52, %v1385_v34  ;;  %v731_v15 = vld [vmem:[%s1451_s3 + $0x8] sm:$0xff] }
  0xf8   : > { %743 = vmatpush.msrb.mxu1 %v708_v31  ;;  %v698_v14 = vmax.f32 %v603_v58, 0.0 }
  0xf9   : > { %759 = vmatpush.msrb.mxu2 %v728_v28  ;;  %v716_v10 = vmax.f32 %v657_v55, 0.0  ;;  %v715_v4 = vmax.f32 %v654_v8, 0.0 }
  0xfa   : > { %744 = vmatpush.msrb.mxu1 %v707_v35 }
  0xfb   : > { %760 = vmatpush.msrb.mxu2 %v727_v9  ;;  %v411_v2 = vpop.permute.xlu2 %410 }
  0xfc   : > { %745 = vmatpush.msrb.mxu1 %v706_v39  ;;  %v651_v59 = vadd.f32 %v1365_v46, %v411_v2 }
  0xfd   : > { %761 = vmatpush.msrb.mxu2 %v726_v36 }
  0xfe   : > { %746 = vmatpush.msrb.mxu1 %v705_v48  ;;  %v714_v13 = vmax.f32 %v651_v59, 0.0 }
  0xff   : > { %762 = vmatpush.msrb.mxu2 %v725_v41 }
 0x100   : > { %747 = vmatpush.msrb.mxu1 %v704_v43 }
 0x101   : > { %763 = vmatpush.msrb.mxu2 %v724_v51 }
 0x102   : > { %748 = vmatpush.msrb.mxu1 %v703_v32 }
 0x103   : > { %764 = vmatpush.msrb.mxu2 %v723_v53  ;;  %v736_v52 = vpop.permute.xlu2 %735 }
 0x104   : > { %749 = vmatpush.msrb.mxu1 %v702_v57 }
 0x105   : > { %765 = vmatpush.msrb.mxu2 %v722_v25 }
 0x106   : > { %750 = vmatpush.msrb.mxu1 %v701_v62 }
 0x107   : > { %766 = vmatpush.msrb.mxu2 %v721_v61 }
 0x108   : > { %751 = vmatpush.msrb.mxu1 %v700_v11 }
 0x109   : > { %767 = vmatpush.msrb.mxu2 %v720_v27 }
 0x10a   : > { %752 = vmatpush.msrb.mxu1 %v699_v3 }
 0x10b   : > { %768 = vmatpush.msrb.mxu2 %v719_v1 }
 0x10c   : > { %753 = vmatpush.msrb.mxu1 %v698_v14 }
 0x10d   : > { %769 = vmatpush.msrb.mxu2 %v718_v5  ;;  %754 = vmatmul.f32.vlgmr.msrb.gmra.mxu1 %v730_v60 }
 0x10f   : > { %770 = vmatpush.msrb.mxu2 %v717_v7 }
 0x111   : > { %771 = vmatpush.msrb.mxu2 %v716_v10 }
 0x113   : > { %772 = vmatpush.msrb.mxu2 %v715_v4 }
 0x115   : > { %773 = vmatpush.msrb.mxu2 %v714_v13 }
 0x116   : > { %774 = vmatmul.f32.vlgmr.msrb.gmra.mxu2 %v731_v15 }
 0x18a   : > { %v755_v46 = vpop.f32.mrf.mxu1 }
 0x18b   : > { %v756_v16 = vadd.f32 %v755_v46, %v736_v52 }
 0x199   : > { %v775_v17 = vpop.f32.mrf.mxu2 }
 0x19a   : > { %v776_v18 = vadd.f32 %v775_v17, %v756_v16 }
 0x19c   : > { %778 = vst [vmem:[%s261_s25] sm:$0xff] %v776_v18 }
 0x19d   : > { %980 = shalt.err (!%p977_p5)
}
 0x19e   : > { %910 = dma.vmem_to_hbm [thread:$0]  (%p1086_p6), %s793_s26, 128, %s795_s30, %s780_s6  }
 0x19f PF: > { %s806_s16 = sand.u32 1, %s1003_s18   ;;  %p913_p7 = pnand %p862_p9, %p1090_p8 }
 0x1a0   : > { %s807_s13 = scalar_lea.sflag [#allocation4], %s806_s16 }
 0x1a1   : > { %p914_p10 = pneg %p913_p7 }
 0x1a3   : > { %998 = dma.done.wait (%p914_p10), %s807_s13, 128  }
 0x1a4   : > { %1000 = vsyncadd (%p914_p10), %s807_s13, 4294967168  ;;  %p15_p11 = scmp.ge.s32.totalorder %s1071_s24, 4   ;;  %s1456_s18 = smov %s1007_s19 }
 0x1a5   : > { %s1457_s19 = smov %s1011_s20  ;;  %s1458_s20 = smov %s1084_s27 }
 0x1a6   : > { %s1459_s21 = smov %s1071_s24  ;;  %17 = sbr.rel (!%p15_p11) target bundleno = 3 (0x3), region = 118 }
 0x1ab   :  { %813 = vsyncpa [#allocation4], 1 }
 0x1ac   :  { %815 = vsyncpa [#allocation4 + $0x1], 1 }

</bundles_post_ra>
